<compile_context>
chip_gen: v7x
topology: tpu7x:2x2x1
jax: 0.10.0
libtpu: 0.0.40
codegen_flags: <defaults>
</compile_context>

<pallas_src>
import functools

import jax
import jax.numpy as jnp
from jax.experimental import pallas as pl
from jax.experimental.pallas import tpu as pltpu

LN_EPS = 1e-5                     # matches torch.nn.LayerNorm default
VMEM_LIMIT = 48 * 1024 * 1024     # safe on v5e/v6e (128 MiB) and v7x (64 MiB)


def _layernorm(x, w, b):
    mu = jnp.mean(x, axis=-1, keepdims=True)
    var = jnp.mean(jnp.square(x - mu), axis=-1, keepdims=True)
    return (x - mu) * jax.lax.rsqrt(var + LN_EPS) * w + b


def _gelu(x):
    # exact (erf-based) GELU, matching torch.nn.GELU default
    return 0.5 * x * (1.0 + jax.lax.erf(x * 0.7071067811865476))


def block_kernel(num_heads,
                 x_ref, ln1w_ref, ln1b_ref,
                 wqkv_ref, bqkv_ref,
                 wp_ref, bp_ref,
                 ln2w_ref, ln2b_ref,
                 w1_ref, b1_ref, w2_ref, b2_ref,
                 out_ref):
    """One transformer block (pre-LN attention + pre-LN MLP) for one batch row."""
    x = x_ref[0]                        # (T, C) f32
    T, C = x.shape
    Dh = C // num_heads
    scale = 1.0 / float(Dh) ** 0.5

    # ---- masked self-attention ----
    h = _layernorm(x, ln1w_ref[...], ln1b_ref[...])                    # f32
    qkv = jnp.dot(h.astype(jnp.bfloat16), wqkv_ref[...],
                  preferred_element_type=jnp.float32) + bqkv_ref[...]  # (T, 3C) f32
    # fold the attention scale into q once (saves a per-head (T,T) multiply)
    q = (qkv[:, 0 * C:1 * C] * scale).astype(jnp.bfloat16)
    k = qkv[:, 1 * C:2 * C].astype(jnp.bfloat16)
    v = qkv[:, 2 * C:3 * C].astype(jnp.bfloat16)

    # additive causal mask, computed once (0 where allowed, -1e30 where masked)
    row = jax.lax.broadcasted_iota(jnp.int32, (T, T), 0)
    col = jax.lax.broadcasted_iota(jnp.int32, (T, T), 1)
    add_mask = jnp.where(row >= col, 0.0, -1e30).astype(jnp.float32)

    # per-head attention, accumulated directly through the output projection
    # (no concat along the lane dimension, no per-head select/-inf handling)
    y_attn = jnp.zeros((T, C), jnp.float32)
    for hh in range(num_heads):          # static Python loop over heads
        lo = hh * Dh
        qh = q[:, lo:lo + Dh]
        kh = k[:, lo:lo + Dh]
        vh = v[:, lo:lo + Dh]
        s = jax.lax.dot_general(qh, kh, (((1,), (1,)), ((), ())),
                                preferred_element_type=jnp.float32)
        s = s + add_mask
        s = s - jnp.max(s, axis=-1, keepdims=True)
        p = jnp.exp(s)
        p = p * pl.reciprocal(jnp.sum(p, axis=-1, keepdims=True), approx=True)
        ctx = jnp.dot(p.astype(jnp.bfloat16), vh,
                      preferred_element_type=jnp.float32)              # (T, Dh)
        y_attn = y_attn + jnp.dot(ctx.astype(jnp.bfloat16),
                                  wp_ref[lo:lo + Dh, :],
                                  preferred_element_type=jnp.float32)
    x = x + y_attn + bp_ref[...]

    # ---- MLP ----
    h2 = _layernorm(x, ln2w_ref[...], ln2b_ref[...])
    h2 = jnp.dot(h2.astype(jnp.bfloat16), w1_ref[...],
                 preferred_element_type=jnp.float32) + b1_ref[...]
    h2 = _gelu(h2)
    h2 = jnp.dot(h2.astype(jnp.bfloat16), w2_ref[...],
                 preferred_element_type=jnp.float32) + b2_ref[...]
    out_ref[0] = x + h2


def head_kernel(x_ref, lnw_ref, lnb_ref, wh_ref, out_ref, xln_ref):
    """Final LayerNorm + vocab projection (no bias).

    The input is flattened to rows (B*T, C); the grid is (row_tiles, vocab
    tiles).  The LayerNorm result for the current row tile is computed once
    (vocab tile j == 0) into a bf16 VMEM scratch and reused for every vocab
    tile.
    """
    @pl.when(pl.program_id(1) == 0)
    def _():
        xln_ref[...] = _layernorm(x_ref[...], lnw_ref[...],
                                  lnb_ref[...]).astype(jnp.bfloat16)

    out_ref[...] = jnp.dot(xln_ref[...], wh_ref[...],
                           preferred_element_type=jnp.float32)


def run_block(x, layer_params, num_heads):
    B, T, C = x.shape

    def vec(n):
        return pl.BlockSpec((1, n), lambda b: (0, 0))

    def mat(shape):
        return pl.BlockSpec(shape, lambda b: (0, 0))

    in_specs = [
        pl.BlockSpec((1, T, C), lambda b: (b, 0, 0)),   # x
        vec(C), vec(C),                                 # ln1 w, b
        mat((C, 3 * C)), vec(3 * C),                    # fused Wqkv, bqkv
        mat((C, C)), vec(C),                            # Wproj, bproj
        vec(C), vec(C),                                 # ln2 w, b
        mat((C, 4 * C)), vec(4 * C),                    # W1, b1
        mat((4 * C, C)), vec(C),                        # W2, b2
    ]
    out_spec = pl.BlockSpec((1, T, C), lambda b: (b, 0, 0))

    return pl.pallas_call(
        functools.partial(block_kernel, num_heads),
        out_shape=jax.ShapeDtypeStruct((B, T, C), jnp.float32),
        grid=(B,),
        in_specs=in_specs,
        out_specs=out_spec,
        compiler_params=pltpu.CompilerParams(
            dimension_semantics=("parallel",),
            vmem_limit_bytes=VMEM_LIMIT),
    )(x, *layer_params)


def run_head(x, ln_w, ln_b, head_w):
    B, T, C = x.shape
    V = head_w.shape[1]

    # pad vocab to a 128 multiple so output tiles are lane-dense (unmasked vst)
    V_pad = ((V + 127) // 128) * 128
    if V_pad != V:
        head_w = jnp.pad(head_w, ((0, 0), (0, V_pad - V)))
    v_tile = 128
    for cand in (1024, 512, 256, 128):
        if V_pad % cand == 0:
            v_tile = cand
            break
    n_vt = V_pad // v_tile

    # flatten (B, T) -> rows so the head matmul is sublane-dense and tiled
    R = B * T
    r_tile = min(256, ((R + 7) // 8) * 8)
    R_pad = ((R + r_tile - 1) // r_tile) * r_tile
    x2 = x.reshape(R, C)
    if R_pad != R:
        x2 = jnp.pad(x2, ((0, R_pad - R), (0, 0)))
    n_rt = R_pad // r_tile

    logits = pl.pallas_call(
        head_kernel,
        out_shape=jax.ShapeDtypeStruct((R_pad, V_pad), jnp.float32),
        grid=(n_rt, n_vt),
        in_specs=[
            pl.BlockSpec((r_tile, C), lambda i, j: (i, 0)),
            pl.BlockSpec((1, C), lambda i, j: (0, 0)),
            pl.BlockSpec((1, C), lambda i, j: (0, 0)),
            pl.BlockSpec((C, v_tile), lambda i, j: (0, j)),
        ],
        out_specs=pl.BlockSpec((r_tile, v_tile), lambda i, j: (i, j)),
        scratch_shapes=[pltpu.VMEM((r_tile, C), jnp.bfloat16)],
        compiler_params=pltpu.CompilerParams(
            dimension_semantics=("parallel", "arbitrary"),
            vmem_limit_bytes=VMEM_LIMIT),
    )(x2, ln_w, ln_b, head_w)
    return logits[:R, :V].reshape(B, T, V)


def init_params(key, vocab_size, emb_dim, num_heads, num_layers, block_size):
    C = emb_dim
    n_rand = 2 + num_layers * 4  # token emb + head + 4 random matrices per layer
    keys = iter(jax.random.split(key, n_rand))

    def nrm(shape, dtype=jnp.bfloat16):
        return (0.02 * jax.random.normal(next(keys), shape)).astype(dtype)

    params = {
        "token_emb": nrm((vocab_size, C), jnp.float32),
        # nn.Parameter(torch.zeros(...)) is untouched by _init_weights -> stays zero
        "pos_emb": jnp.zeros((1, block_size, C), jnp.float32),
        "ln_f_w": jnp.ones((1, C), jnp.float32),
        "ln_f_b": jnp.zeros((1, C), jnp.float32),
        "head_w": nrm((C, vocab_size)),                                  # bf16
        "blocks": [],
    }
    for _ in range(num_layers):
        layer = (
            jnp.ones((1, C), jnp.float32), jnp.zeros((1, C), jnp.float32),   # ln1
            nrm((C, 3 * C)), jnp.zeros((1, 3 * C), jnp.float32),             # fused qkv
            nrm((C, C)), jnp.zeros((1, C), jnp.float32),                     # proj
            jnp.ones((1, C), jnp.float32), jnp.zeros((1, C), jnp.float32),   # ln2
            nrm((C, 4 * C)), jnp.zeros((1, 4 * C), jnp.float32),             # mlp fc1
            nrm((4 * C, C)), jnp.zeros((1, C), jnp.float32),                 # mlp fc2
        )
        params["blocks"].append(layer)
    return params


def gpt_forward(params, idx, num_heads):
    # glue: embedding gather + positional add stay in plain JAX
    B, T = idx.shape
    x = params["token_emb"][idx]                       # (B, T, C)
    x = x + params["pos_emb"][:, :T, :]                # emb_dropout == identity
    for layer_params in params["blocks"]:
        x = run_block(x, layer_params, num_heads)
    logits = run_head(x, params["ln_f_w"], params["ln_f_b"], params["head_w"])
    return logits


if __name__ == "__main__":
    # small config consistent with the module's constructor
    vocab_size = 64
    emb_dim = 32
    num_heads = 4
    num_layers = 2
    block_size = 8
    batch = 2
    seq = 8  # <= block_size

    key = jax.random.PRNGKey(0)
    pkey, ikey = jax.random.split(key)
    params = init_params(pkey, vocab_size, emb_dim, num_heads, num_layers, block_size)
    idx = jax.random.randint(ikey, (batch, seq), 0, vocab_size, dtype=jnp.int32)

    fwd = jax.jit(functools.partial(gpt_forward, num_heads=num_heads))
    logits = fwd(params, idx)
    logits = jax.block_until_ready(logits)
    assert logits.shape == (batch, seq, vocab_size)
    assert bool(jnp.all(jnp.isfinite(logits)))
    print("KERNEL_OK")
</pallas_src>

<mosaic_0001>
module attributes {stable_mosaic.version = 11 : i64} {
  func.func @block_kernel(%arg0: i32, %arg1: memref<1x8x32xf32, #tpu.memory_space<vmem>>, %arg2: memref<1x32xf32, #tpu.memory_space<vmem>>, %arg3: memref<1x32xf32, #tpu.memory_space<vmem>>, %arg4: memref<32x96xbf16, #tpu.memory_space<vmem>>, %arg5: memref<1x96xf32, #tpu.memory_space<vmem>>, %arg6: memref<32x32xbf16, #tpu.memory_space<vmem>>, %arg7: memref<1x32xf32, #tpu.memory_space<vmem>>, %arg8: memref<1x32xf32, #tpu.memory_space<vmem>>, %arg9: memref<1x32xf32, #tpu.memory_space<vmem>>, %arg10: memref<32x128xbf16, #tpu.memory_space<vmem>>, %arg11: memref<1x128xf32, #tpu.memory_space<vmem>>, %arg12: memref<128x32xbf16, #tpu.memory_space<vmem>>, %arg13: memref<1x32xf32, #tpu.memory_space<vmem>>, %arg14: memref<1x8x32xf32, #tpu.memory_space<vmem>>) attributes {dimension_semantics = [#tpu.dimension_semantics<parallel>], iteration_bounds = array<i64: 2>, scalar_prefetch = 0 : i64, scratch_operands = 0 : i64, tpu.core_type = #tpu.core_type<tc>, window_params = [{transform_indices = @transform_0, window_bounds = array<i64: 1, 8, 32>}, {pipeline_mode = #tpu.pipeline_mode<synchronous>, transform_indices = @transform_1, window_bounds = array<i64: 1, 32>}, {pipeline_mode = #tpu.pipeline_mode<synchronous>, transform_indices = @transform_2, window_bounds = array<i64: 1, 32>}, {pipeline_mode = #tpu.pipeline_mode<synchronous>, transform_indices = @transform_3, window_bounds = array<i64: 32, 96>}, {pipeline_mode = #tpu.pipeline_mode<synchronous>, transform_indices = @transform_4, window_bounds = array<i64: 1, 96>}, {pipeline_mode = #tpu.pipeline_mode<synchronous>, transform_indices = @transform_5, window_bounds = array<i64: 32, 32>}, {pipeline_mode = #tpu.pipeline_mode<synchronous>, transform_indices = @transform_6, window_bounds = array<i64: 1, 32>}, {pipeline_mode = #tpu.pipeline_mode<synchronous>, transform_indices = @transform_7, window_bounds = array<i64: 1, 32>}, {pipeline_mode = #tpu.pipeline_mode<synchronous>, transform_indices = @transform_8, window_bounds = array<i64: 1, 32>}, {pipeline_mode = #tpu.pipeline_mode<synchronous>, transform_indices = @transform_9, window_bounds = array<i64: 32, 128>}, {pipeline_mode = #tpu.pipeline_mode<synchronous>, transform_indices = @transform_10, window_bounds = array<i64: 1, 128>}, {pipeline_mode = #tpu.pipeline_mode<synchronous>, transform_indices = @transform_11, window_bounds = array<i64: 128, 32>}, {pipeline_mode = #tpu.pipeline_mode<synchronous>, transform_indices = @transform_12, window_bounds = array<i64: 1, 32>}, {transform_indices = @transform_13, window_bounds = array<i64: 1, 8, 32>}]} {
    %c0 = arith.constant 0 : index
    %c0_0 = arith.constant 0 : index
    %c0_1 = arith.constant 0 : index
    %0 = vector.load %arg1[%c0, %c0_0, %c0_1] : memref<1x8x32xf32, #tpu.memory_space<vmem>>, vector<1x8x32xf32>
    %1 = vector.shape_cast %0 : vector<1x8x32xf32> to vector<8x32xf32>
    %c0_2 = arith.constant 0 : index
    %c0_3 = arith.constant 0 : index
    %2 = vector.load %arg2[%c0_2, %c0_3] : memref<1x32xf32, #tpu.memory_space<vmem>>, vector<1x32xf32>
    %c0_4 = arith.constant 0 : index
    %c0_5 = arith.constant 0 : index
    %3 = vector.load %arg3[%c0_4, %c0_5] : memref<1x32xf32, #tpu.memory_space<vmem>>, vector<1x32xf32>
    %cst = arith.constant dense<0.000000e+00> : vector<8xf32>
    %4 = vector.multi_reduction <add>, %1, %cst [1] : vector<8x32xf32> to vector<8xf32>
    %5 = vector.shape_cast %4 : vector<8xf32> to vector<8x1xf32>
    %cst_6 = arith.constant 3.200000e+01 : f32
    %6 = vector.broadcast %cst_6 : f32 to vector<8x1xf32>
    %7 = arith.divf %5, %6 : vector<8x1xf32>
    %8 = vector.broadcast %7 : vector<8x1xf32> to vector<8x32xf32>
    %9 = arith.subf %1, %8 : vector<8x32xf32>
    %10 = arith.mulf %9, %9 : vector<8x32xf32>
    %cst_7 = arith.constant dense<0.000000e+00> : vector<8xf32>
    %11 = vector.multi_reduction <add>, %10, %cst_7 [1] : vector<8x32xf32> to vector<8xf32>
    %12 = vector.shape_cast %11 : vector<8xf32> to vector<8x1xf32>
    %cst_8 = arith.constant 3.200000e+01 : f32
    %13 = vector.broadcast %cst_8 : f32 to vector<8x1xf32>
    %14 = arith.divf %12, %13 : vector<8x1xf32>
    %15 = vector.broadcast %7 : vector<8x1xf32> to vector<8x32xf32>
    %16 = arith.subf %1, %15 : vector<8x32xf32>
    %cst_9 = arith.constant 9.99999974E-6 : f32
    %17 = vector.broadcast %cst_9 : f32 to vector<8x1xf32>
    %18 = arith.addf %14, %17 : vector<8x1xf32>
    %19 = math.rsqrt %18 : vector<8x1xf32>
    %20 = vector.broadcast %19 : vector<8x1xf32> to vector<8x32xf32>
    %21 = arith.mulf %16, %20 : vector<8x32xf32>
    %22 = vector.broadcast %2 : vector<1x32xf32> to vector<8x32xf32>
    %23 = arith.mulf %21, %22 : vector<8x32xf32>
    %24 = vector.broadcast %3 : vector<1x32xf32> to vector<8x32xf32>
    %25 = arith.addf %23, %24 : vector<8x32xf32>
    %26 = arith.truncf %25 : vector<8x32xf32> to vector<8x32xbf16>
    %c0_10 = arith.constant 0 : index
    %c0_11 = arith.constant 0 : index
    %27 = vector.load %arg4[%c0_10, %c0_11] : memref<32x96xbf16, #tpu.memory_space<vmem>>, vector<32x96xbf16>
    %cst_12 = arith.constant dense<0.000000e+00> : vector<8x96xf32>
    %28 = tpu.matmul %26, %27, %cst_12 {dimension_numbers = #tpu.dot_dimension_numbers<[1], [0], [0], [1], [0, 0, 1, 1], [], []>} : vector<8x32xbf16>, vector<32x96xbf16>, vector<8x96xf32> -> vector<8x96xf32>
    %c0_13 = arith.constant 0 : index
    %c0_14 = arith.constant 0 : index
    %29 = vector.load %arg5[%c0_13, %c0_14] : memref<1x96xf32, #tpu.memory_space<vmem>>, vector<1x96xf32>
    %30 = vector.broadcast %29 : vector<1x96xf32> to vector<8x96xf32>
    %31 = arith.addf %28, %30 : vector<8x96xf32>
    %32 = vector.extract_strided_slice %31 {offsets = [0, 0], sizes = [8, 32], strides = [1, 1]} : vector<8x96xf32> to vector<8x32xf32>
    %cst_15 = arith.constant 0.353553385 : f32
    %33 = vector.broadcast %cst_15 : f32 to vector<8x32xf32>
    %34 = arith.mulf %32, %33 : vector<8x32xf32>
    %35 = arith.truncf %34 : vector<8x32xf32> to vector<8x32xbf16>
    %36 = vector.extract_strided_slice %31 {offsets = [0, 32], sizes = [8, 32], strides = [1, 1]} : vector<8x96xf32> to vector<8x32xf32>
    %37 = arith.truncf %36 : vector<8x32xf32> to vector<8x32xbf16>
    %38 = vector.extract_strided_slice %31 {offsets = [0, 64], sizes = [8, 32], strides = [1, 1]} : vector<8x96xf32> to vector<8x32xf32>
    %39 = arith.truncf %38 : vector<8x32xf32> to vector<8x32xbf16>
    %40 = tpu.iota {dimensions = array<i32: 0>} : vector<8x8xi32>
    %41 = tpu.iota {dimensions = array<i32: 1>} : vector<8x8xi32>
    %42 = arith.cmpi sge, %40, %41 : vector<8x8xi32>
    %cst_16 = arith.constant 0.000000e+00 : f32
    %cst_17 = arith.constant -1.000000e+30 : f32
    %43 = vector.broadcast %cst_16 : f32 to vector<8x8xf32>
    %44 = vector.broadcast %cst_17 : f32 to vector<8x8xf32>
    %45 = arith.select %42, %43, %44 : vector<8x8xi1>, vector<8x8xf32>
    %cst_18 = arith.constant 0.000000e+00 : f32
    %46 = vector.broadcast %cst_18 : f32 to vector<8x32xf32>
    %47 = vector.extract_strided_slice %35 {offsets = [0, 0], sizes = [8, 8], strides = [1, 1]} : vector<8x32xbf16> to vector<8x8xbf16>
    %48 = vector.extract_strided_slice %37 {offsets = [0, 0], sizes = [8, 8], strides = [1, 1]} : vector<8x32xbf16> to vector<8x8xbf16>
    %49 = vector.extract_strided_slice %39 {offsets = [0, 0], sizes = [8, 8], strides = [1, 1]} : vector<8x32xbf16> to vector<8x8xbf16>
    %cst_19 = arith.constant dense<0.000000e+00> : vector<8x8xf32>
    %50 = tpu.matmul %47, %48, %cst_19 {dimension_numbers = #tpu.dot_dimension_numbers<[1], [1], [0], [0], [0, 0, 1, 0], [], []>} : vector<8x8xbf16>, vector<8x8xbf16>, vector<8x8xf32> -> vector<8x8xf32>
    %51 = arith.addf %50, %45 : vector<8x8xf32>
    %cst_20 = arith.constant dense<0xFF800000> : vector<8xf32>
    %52 = vector.multi_reduction <maximumf>, %51, %cst_20 [1] : vector<8x8xf32> to vector<8xf32>
    %53 = vector.shape_cast %52 : vector<8xf32> to vector<8x1xf32>
    %54 = vector.broadcast %53 : vector<8x1xf32> to vector<8x8xf32>
    %55 = arith.subf %51, %54 : vector<8x8xf32>
    %56 = math.exp %55 : vector<8x8xf32>
    %cst_21 = arith.constant dense<0.000000e+00> : vector<8xf32>
    %57 = vector.multi_reduction <add>, %56, %cst_21 [1] : vector<8x8xf32> to vector<8xf32>
    %58 = vector.shape_cast %57 : vector<8xf32> to vector<8x1xf32>
    %59 = tpu.reciprocal %58 {approx = true} : vector<8x1xf32> -> vector<8x1xf32>
    %60 = vector.broadcast %59 : vector<8x1xf32> to vector<8x8xf32>
    %61 = arith.mulf %56, %60 : vector<8x8xf32>
    %62 = arith.truncf %61 : vector<8x8xf32> to vector<8x8xbf16>
    %cst_22 = arith.constant dense<0.000000e+00> : vector<8x8xf32>
    %63 = tpu.matmul %62, %49, %cst_22 {dimension_numbers = #tpu.dot_dimension_numbers<[1], [0], [0], [1], [0, 0, 1, 1], [], []>} : vector<8x8xbf16>, vector<8x8xbf16>, vector<8x8xf32> -> vector<8x8xf32>
    %64 = arith.truncf %63 : vector<8x8xf32> to vector<8x8xbf16>
    %c0_23 = arith.constant 0 : index
    %c0_24 = arith.constant 0 : index
    %65 = vector.load %arg6[%c0_23, %c0_24] : memref<32x32xbf16, #tpu.memory_space<vmem>>, vector<8x32xbf16>
    %cst_25 = arith.constant dense<0.000000e+00> : vector<8x32xf32>
    %66 = tpu.matmul %64, %65, %cst_25 {dimension_numbers = #tpu.dot_dimension_numbers<[1], [0], [0], [1], [0, 0, 1, 1], [], []>} : vector<8x8xbf16>, vector<8x32xbf16>, vector<8x32xf32> -> vector<8x32xf32>
    %67 = arith.addf %46, %66 : vector<8x32xf32>
    %68 = vector.extract_strided_slice %35 {offsets = [0, 8], sizes = [8, 8], strides = [1, 1]} : vector<8x32xbf16> to vector<8x8xbf16>
    %69 = vector.extract_strided_slice %37 {offsets = [0, 8], sizes = [8, 8], strides = [1, 1]} : vector<8x32xbf16> to vector<8x8xbf16>
    %70 = vector.extract_strided_slice %39 {offsets = [0, 8], sizes = [8, 8], strides = [1, 1]} : vector<8x32xbf16> to vector<8x8xbf16>
    %cst_26 = arith.constant dense<0.000000e+00> : vector<8x8xf32>
    %71 = tpu.matmul %68, %69, %cst_26 {dimension_numbers = #tpu.dot_dimension_numbers<[1], [1], [0], [0], [0, 0, 1, 0], [], []>} : vector<8x8xbf16>, vector<8x8xbf16>, vector<8x8xf32> -> vector<8x8xf32>
    %72 = arith.addf %71, %45 : vector<8x8xf32>
    %cst_27 = arith.constant dense<0xFF800000> : vector<8xf32>
    %73 = vector.multi_reduction <maximumf>, %72, %cst_27 [1] : vector<8x8xf32> to vector<8xf32>
    %74 = vector.shape_cast %73 : vector<8xf32> to vector<8x1xf32>
    %75 = vector.broadcast %74 : vector<8x1xf32> to vector<8x8xf32>
    %76 = arith.subf %72, %75 : vector<8x8xf32>
    %77 = math.exp %76 : vector<8x8xf32>
    %cst_28 = arith.constant dense<0.000000e+00> : vector<8xf32>
    %78 = vector.multi_reduction <add>, %77, %cst_28 [1] : vector<8x8xf32> to vector<8xf32>
    %79 = vector.shape_cast %78 : vector<8xf32> to vector<8x1xf32>
    %80 = tpu.reciprocal %79 {approx = true} : vector<8x1xf32> -> vector<8x1xf32>
    %81 = vector.broadcast %80 : vector<8x1xf32> to vector<8x8xf32>
    %82 = arith.mulf %77, %81 : vector<8x8xf32>
    %83 = arith.truncf %82 : vector<8x8xf32> to vector<8x8xbf16>
    %cst_29 = arith.constant dense<0.000000e+00> : vector<8x8xf32>
    %84 = tpu.matmul %83, %70, %cst_29 {dimension_numbers = #tpu.dot_dimension_numbers<[1], [0], [0], [1], [0, 0, 1, 1], [], []>} : vector<8x8xbf16>, vector<8x8xbf16>, vector<8x8xf32> -> vector<8x8xf32>
    %85 = arith.truncf %84 : vector<8x8xf32> to vector<8x8xbf16>
    %c8 = arith.constant 8 : index
    %c0_30 = arith.constant 0 : index
    %86 = vector.load %arg6[%c8, %c0_30] : memref<32x32xbf16, #tpu.memory_space<vmem>>, vector<8x32xbf16>
    %cst_31 = arith.constant dense<0.000000e+00> : vector<8x32xf32>
    %87 = tpu.matmul %85, %86, %cst_31 {dimension_numbers = #tpu.dot_dimension_numbers<[1], [0], [0], [1], [0, 0, 1, 1], [], []>} : vector<8x8xbf16>, vector<8x32xbf16>, vector<8x32xf32> -> vector<8x32xf32>
    %88 = arith.addf %67, %87 : vector<8x32xf32>
    %89 = vector.extract_strided_slice %35 {offsets = [0, 16], sizes = [8, 8], strides = [1, 1]} : vector<8x32xbf16> to vector<8x8xbf16>
    %90 = vector.extract_strided_slice %37 {offsets = [0, 16], sizes = [8, 8], strides = [1, 1]} : vector<8x32xbf16> to vector<8x8xbf16>
    %91 = vector.extract_strided_slice %39 {offsets = [0, 16], sizes = [8, 8], strides = [1, 1]} : vector<8x32xbf16> to vector<8x8xbf16>
    %cst_32 = arith.constant dense<0.000000e+00> : vector<8x8xf32>
    %92 = tpu.matmul %89, %90, %cst_32 {dimension_numbers = #tpu.dot_dimension_numbers<[1], [1], [0], [0], [0, 0, 1, 0], [], []>} : vector<8x8xbf16>, vector<8x8xbf16>, vector<8x8xf32> -> vector<8x8xf32>
    %93 = arith.addf %92, %45 : vector<8x8xf32>
    %cst_33 = arith.constant dense<0xFF800000> : vector<8xf32>
    %94 = vector.multi_reduction <maximumf>, %93, %cst_33 [1] : vector<8x8xf32> to vector<8xf32>
    %95 = vector.shape_cast %94 : vector<8xf32> to vector<8x1xf32>
    %96 = vector.broadcast %95 : vector<8x1xf32> to vector<8x8xf32>
    %97 = arith.subf %93, %96 : vector<8x8xf32>
    %98 = math.exp %97 : vector<8x8xf32>
    %cst_34 = arith.constant dense<0.000000e+00> : vector<8xf32>
    %99 = vector.multi_reduction <add>, %98, %cst_34 [1] : vector<8x8xf32> to vector<8xf32>
    %100 = vector.shape_cast %99 : vector<8xf32> to vector<8x1xf32>
    %101 = tpu.reciprocal %100 {approx = true} : vector<8x1xf32> -> vector<8x1xf32>
    %102 = vector.broadcast %101 : vector<8x1xf32> to vector<8x8xf32>
    %103 = arith.mulf %98, %102 : vector<8x8xf32>
    %104 = arith.truncf %103 : vector<8x8xf32> to vector<8x8xbf16>
    %cst_35 = arith.constant dense<0.000000e+00> : vector<8x8xf32>
    %105 = tpu.matmul %104, %91, %cst_35 {dimension_numbers = #tpu.dot_dimension_numbers<[1], [0], [0], [1], [0, 0, 1, 1], [], []>} : vector<8x8xbf16>, vector<8x8xbf16>, vector<8x8xf32> -> vector<8x8xf32>
    %106 = arith.truncf %105 : vector<8x8xf32> to vector<8x8xbf16>
    %c16 = arith.constant 16 : index
    %c0_36 = arith.constant 0 : index
    %107 = vector.load %arg6[%c16, %c0_36] : memref<32x32xbf16, #tpu.memory_space<vmem>>, vector<8x32xbf16>
    %cst_37 = arith.constant dense<0.000000e+00> : vector<8x32xf32>
    %108 = tpu.matmul %106, %107, %cst_37 {dimension_numbers = #tpu.dot_dimension_numbers<[1], [0], [0], [1], [0, 0, 1, 1], [], []>} : vector<8x8xbf16>, vector<8x32xbf16>, vector<8x32xf32> -> vector<8x32xf32>
    %109 = arith.addf %88, %108 : vector<8x32xf32>
    %110 = vector.extract_strided_slice %35 {offsets = [0, 24], sizes = [8, 8], strides = [1, 1]} : vector<8x32xbf16> to vector<8x8xbf16>
    %111 = vector.extract_strided_slice %37 {offsets = [0, 24], sizes = [8, 8], strides = [1, 1]} : vector<8x32xbf16> to vector<8x8xbf16>
    %112 = vector.extract_strided_slice %39 {offsets = [0, 24], sizes = [8, 8], strides = [1, 1]} : vector<8x32xbf16> to vector<8x8xbf16>
    %cst_38 = arith.constant dense<0.000000e+00> : vector<8x8xf32>
    %113 = tpu.matmul %110, %111, %cst_38 {dimension_numbers = #tpu.dot_dimension_numbers<[1], [1], [0], [0], [0, 0, 1, 0], [], []>} : vector<8x8xbf16>, vector<8x8xbf16>, vector<8x8xf32> -> vector<8x8xf32>
    %114 = arith.addf %113, %45 : vector<8x8xf32>
    %cst_39 = arith.constant dense<0xFF800000> : vector<8xf32>
    %115 = vector.multi_reduction <maximumf>, %114, %cst_39 [1] : vector<8x8xf32> to vector<8xf32>
    %116 = vector.shape_cast %115 : vector<8xf32> to vector<8x1xf32>
    %117 = vector.broadcast %116 : vector<8x1xf32> to vector<8x8xf32>
    %118 = arith.subf %114, %117 : vector<8x8xf32>
    %119 = math.exp %118 : vector<8x8xf32>
    %cst_40 = arith.constant dense<0.000000e+00> : vector<8xf32>
    %120 = vector.multi_reduction <add>, %119, %cst_40 [1] : vector<8x8xf32> to vector<8xf32>
    %121 = vector.shape_cast %120 : vector<8xf32> to vector<8x1xf32>
    %122 = tpu.reciprocal %121 {approx = true} : vector<8x1xf32> -> vector<8x1xf32>
    %123 = vector.broadcast %122 : vector<8x1xf32> to vector<8x8xf32>
    %124 = arith.mulf %119, %123 : vector<8x8xf32>
    %125 = arith.truncf %124 : vector<8x8xf32> to vector<8x8xbf16>
    %cst_41 = arith.constant dense<0.000000e+00> : vector<8x8xf32>
    %126 = tpu.matmul %125, %112, %cst_41 {dimension_numbers = #tpu.dot_dimension_numbers<[1], [0], [0], [1], [0, 0, 1, 1], [], []>} : vector<8x8xbf16>, vector<8x8xbf16>, vector<8x8xf32> -> vector<8x8xf32>
    %127 = arith.truncf %126 : vector<8x8xf32> to vector<8x8xbf16>
    %c24 = arith.constant 24 : index
    %c0_42 = arith.constant 0 : index
    %128 = vector.load %arg6[%c24, %c0_42] : memref<32x32xbf16, #tpu.memory_space<vmem>>, vector<8x32xbf16>
    %cst_43 = arith.constant dense<0.000000e+00> : vector<8x32xf32>
    %129 = tpu.matmul %127, %128, %cst_43 {dimension_numbers = #tpu.dot_dimension_numbers<[1], [0], [0], [1], [0, 0, 1, 1], [], []>} : vector<8x8xbf16>, vector<8x32xbf16>, vector<8x32xf32> -> vector<8x32xf32>
    %130 = arith.addf %109, %129 : vector<8x32xf32>
    %131 = arith.addf %1, %130 : vector<8x32xf32>
    %c0_44 = arith.constant 0 : index
    %c0_45 = arith.constant 0 : index
    %132 = vector.load %arg7[%c0_44, %c0_45] : memref<1x32xf32, #tpu.memory_space<vmem>>, vector<1x32xf32>
    %133 = vector.broadcast %132 : vector<1x32xf32> to vector<8x32xf32>
    %134 = arith.addf %131, %133 : vector<8x32xf32>
    %c0_46 = arith.constant 0 : index
    %c0_47 = arith.constant 0 : index
    %135 = vector.load %arg8[%c0_46, %c0_47] : memref<1x32xf32, #tpu.memory_space<vmem>>, vector<1x32xf32>
    %c0_48 = arith.constant 0 : index
    %c0_49 = arith.constant 0 : index
    %136 = vector.load %arg9[%c0_48, %c0_49] : memref<1x32xf32, #tpu.memory_space<vmem>>, vector<1x32xf32>
    %cst_50 = arith.constant dense<0.000000e+00> : vector<8xf32>
    %137 = vector.multi_reduction <add>, %134, %cst_50 [1] : vector<8x32xf32> to vector<8xf32>
    %138 = vector.shape_cast %137 : vector<8xf32> to vector<8x1xf32>
    %cst_51 = arith.constant 3.200000e+01 : f32
    %139 = vector.broadcast %cst_51 : f32 to vector<8x1xf32>
    %140 = arith.divf %138, %139 : vector<8x1xf32>
    %141 = vector.broadcast %140 : vector<8x1xf32> to vector<8x32xf32>
    %142 = arith.subf %134, %141 : vector<8x32xf32>
    %143 = arith.mulf %142, %142 : vector<8x32xf32>
    %cst_52 = arith.constant dense<0.000000e+00> : vector<8xf32>
    %144 = vector.multi_reduction <add>, %143, %cst_52 [1] : vector<8x32xf32> to vector<8xf32>
    %145 = vector.shape_cast %144 : vector<8xf32> to vector<8x1xf32>
    %cst_53 = arith.constant 3.200000e+01 : f32
    %146 = vector.broadcast %cst_53 : f32 to vector<8x1xf32>
    %147 = arith.divf %145, %146 : vector<8x1xf32>
    %148 = vector.broadcast %140 : vector<8x1xf32> to vector<8x32xf32>
    %149 = arith.subf %134, %148 : vector<8x32xf32>
    %cst_54 = arith.constant 9.99999974E-6 : f32
    %150 = vector.broadcast %cst_54 : f32 to vector<8x1xf32>
    %151 = arith.addf %147, %150 : vector<8x1xf32>
    %152 = math.rsqrt %151 : vector<8x1xf32>
    %153 = vector.broadcast %152 : vector<8x1xf32> to vector<8x32xf32>
    %154 = arith.mulf %149, %153 : vector<8x32xf32>
    %155 = vector.broadcast %135 : vector<1x32xf32> to vector<8x32xf32>
    %156 = arith.mulf %154, %155 : vector<8x32xf32>
    %157 = vector.broadcast %136 : vector<1x32xf32> to vector<8x32xf32>
    %158 = arith.addf %156, %157 : vector<8x32xf32>
    %159 = arith.truncf %158 : vector<8x32xf32> to vector<8x32xbf16>
    %c0_55 = arith.constant 0 : index
    %c0_56 = arith.constant 0 : index
    %160 = vector.load %arg10[%c0_55, %c0_56] : memref<32x128xbf16, #tpu.memory_space<vmem>>, vector<32x128xbf16>
    %cst_57 = arith.constant dense<0.000000e+00> : vector<8x128xf32>
    %161 = tpu.matmul %159, %160, %cst_57 {dimension_numbers = #tpu.dot_dimension_numbers<[1], [0], [0], [1], [0, 0, 1, 1], [], []>} : vector<8x32xbf16>, vector<32x128xbf16>, vector<8x128xf32> -> vector<8x128xf32>
    %c0_58 = arith.constant 0 : index
    %c0_59 = arith.constant 0 : index
    %162 = vector.load %arg11[%c0_58, %c0_59] : memref<1x128xf32, #tpu.memory_space<vmem>>, vector<1x128xf32>
    %163 = vector.broadcast %162 : vector<1x128xf32> to vector<8x128xf32>
    %164 = arith.addf %161, %163 : vector<8x128xf32>
    %cst_60 = arith.constant 5.000000e-01 : f32
    %165 = vector.broadcast %cst_60 : f32 to vector<8x128xf32>
    %166 = arith.mulf %165, %164 : vector<8x128xf32>
    %cst_61 = arith.constant 0.707106769 : f32
    %167 = vector.broadcast %cst_61 : f32 to vector<8x128xf32>
    %168 = arith.mulf %164, %167 : vector<8x128xf32>
    %169 = math.erf %168 : vector<8x128xf32>
    %cst_62 = arith.constant 1.000000e+00 : f32
    %170 = vector.broadcast %cst_62 : f32 to vector<8x128xf32>
    %171 = arith.addf %170, %169 : vector<8x128xf32>
    %172 = arith.mulf %166, %171 : vector<8x128xf32>
    %173 = arith.truncf %172 : vector<8x128xf32> to vector<8x128xbf16>
    %c0_63 = arith.constant 0 : index
    %c0_64 = arith.constant 0 : index
    %174 = vector.load %arg12[%c0_63, %c0_64] : memref<128x32xbf16, #tpu.memory_space<vmem>>, vector<128x32xbf16>
    %cst_65 = arith.constant dense<0.000000e+00> : vector<8x32xf32>
    %175 = tpu.matmul %173, %174, %cst_65 {dimension_numbers = #tpu.dot_dimension_numbers<[1], [0], [0], [1], [0, 0, 1, 1], [], []>} : vector<8x128xbf16>, vector<128x32xbf16>, vector<8x32xf32> -> vector<8x32xf32>
    %c0_66 = arith.constant 0 : index
    %c0_67 = arith.constant 0 : index
    %176 = vector.load %arg13[%c0_66, %c0_67] : memref<1x32xf32, #tpu.memory_space<vmem>>, vector<1x32xf32>
    %177 = vector.broadcast %176 : vector<1x32xf32> to vector<8x32xf32>
    %178 = arith.addf %175, %177 : vector<8x32xf32>
    %179 = arith.addf %134, %178 : vector<8x32xf32>
    %c0_68 = arith.constant 0 : index
    %c0_69 = arith.constant 0 : index
    %c0_70 = arith.constant 0 : index
    %180 = vector.load %arg14[%c0_68, %c0_69, %c0_70] : memref<1x8x32xf32, #tpu.memory_space<vmem>>, vector<1x8x32xf32>
    %181 = vector.shape_cast %180 : vector<1x8x32xf32> to vector<8x32xf32>
    %182 = vector.shape_cast %179 : vector<8x32xf32> to vector<1x8x32xf32>
    tpu.vector_store %arg14[%c0_68, %c0_69, %c0_70], %182 {strides = array<i32>} : memref<1x8x32xf32, #tpu.memory_space<vmem>>, vector<1x8x32xf32>,
    return
  }
  func.func @transform_0(%arg0: i32) -> (i32, i32, i32) {
    %c0_i32 = arith.constant 0 : i32
    %c0_i32_0 = arith.constant 0 : i32
    %c0_i32_1 = arith.constant 0 : i32
    return %arg0, %c0_i32, %c0_i32_0 : i32, i32, i32
  }
  func.func @transform_1(%arg0: i32) -> (i32, i32) {
    %c0_i32 = arith.constant 0 : i32
    %c0_i32_0 = arith.constant 0 : i32
    %c0_i32_1 = arith.constant 0 : i32
    return %c0_i32, %c0_i32_0 : i32, i32
  }
  func.func @transform_2(%arg0: i32) -> (i32, i32) {
    %c0_i32 = arith.constant 0 : i32
    %c0_i32_0 = arith.constant 0 : i32
    %c0_i32_1 = arith.constant 0 : i32
    return %c0_i32, %c0_i32_0 : i32, i32
  }
  func.func @transform_3(%arg0: i32) -> (i32, i32) {
    %c0_i32 = arith.constant 0 : i32
    %c0_i32_0 = arith.constant 0 : i32
    %c0_i32_1 = arith.constant 0 : i32
    return %c0_i32, %c0_i32_0 : i32, i32
  }
  func.func @transform_4(%arg0: i32) -> (i32, i32) {
    %c0_i32 = arith.constant 0 : i32
    %c0_i32_0 = arith.constant 0 : i32
    %c0_i32_1 = arith.constant 0 : i32
    return %c0_i32, %c0_i32_0 : i32, i32
  }
  func.func @transform_5(%arg0: i32) -> (i32, i32) {
    %c0_i32 = arith.constant 0 : i32
    %c0_i32_0 = arith.constant 0 : i32
    %c0_i32_1 = arith.constant 0 : i32
    return %c0_i32, %c0_i32_0 : i32, i32
  }
  func.func @transform_6(%arg0: i32) -> (i32, i32) {
    %c0_i32 = arith.constant 0 : i32
    %c0_i32_0 = arith.constant 0 : i32
    %c0_i32_1 = arith.constant 0 : i32
    return %c0_i32, %c0_i32_0 : i32, i32
  }
  func.func @transform_7(%arg0: i32) -> (i32, i32) {
    %c0_i32 = arith.constant 0 : i32
    %c0_i32_0 = arith.constant 0 : i32
    %c0_i32_1 = arith.constant 0 : i32
    return %c0_i32, %c0_i32_0 : i32, i32
  }
  func.func @transform_8(%arg0: i32) -> (i32, i32) {
    %c0_i32 = arith.constant 0 : i32
    %c0_i32_0 = arith.constant 0 : i32
    %c0_i32_1 = arith.constant 0 : i32
    return %c0_i32, %c0_i32_0 : i32, i32
  }
  func.func @transform_9(%arg0: i32) -> (i32, i32) {
    %c0_i32 = arith.constant 0 : i32
    %c0_i32_0 = arith.constant 0 : i32
    %c0_i32_1 = arith.constant 0 : i32
    return %c0_i32, %c0_i32_0 : i32, i32
  }
  func.func @transform_10(%arg0: i32) -> (i32, i32) {
    %c0_i32 = arith.constant 0 : i32
    %c0_i32_0 = arith.constant 0 : i32
    %c0_i32_1 = arith.constant 0 : i32
    return %c0_i32, %c0_i32_0 : i32, i32
  }
  func.func @transform_11(%arg0: i32) -> (i32, i32) {
    %c0_i32 = arith.constant 0 : i32
    %c0_i32_0 = arith.constant 0 : i32
    %c0_i32_1 = arith.constant 0 : i32
    return %c0_i32, %c0_i32_0 : i32, i32
  }
  func.func @transform_12(%arg0: i32) -> (i32, i32) {
    %c0_i32 = arith.constant 0 : i32
    %c0_i32_0 = arith.constant 0 : i32
    %c0_i32_1 = arith.constant 0 : i32
    return %c0_i32, %c0_i32_0 : i32, i32
  }
  func.func @transform_13(%arg0: i32) -> (i32, i32, i32) {
    %c0_i32 = arith.constant 0 : i32
    %c0_i32_0 = arith.constant 0 : i32
    %c0_i32_1 = arith.constant 0 : i32
    return %arg0, %c0_i32, %c0_i32_0 : i32, i32, i32
  }
}

module attributes {stable_mosaic.version = 11 : i64} {
  func.func @head_kernel(%arg0: i32, %arg1: i32, %arg2: memref<16x32xf32, #tpu.memory_space<vmem>>, %arg3: memref<1x32xf32, #tpu.memory_space<vmem>>, %arg4: memref<1x32xf32, #tpu.memory_space<vmem>>, %arg5: memref<32x128xbf16, #tpu.memory_space<vmem>>, %arg6: memref<16x128xf32, #tpu.memory_space<vmem>>, %arg7: memref<16x32xbf16, #tpu.memory_space<vmem>>) attributes {dimension_semantics = [#tpu.dimension_semantics<parallel>, #tpu.dimension_semantics<arbitrary>], iteration_bounds = array<i64: 1, 1>, scalar_prefetch = 0 : i64, scratch_operands = 1 : i64, tpu.core_type = #tpu.core_type<tc>, window_params = [{transform_indices = @transform_0, window_bounds = array<i64: 16, 32>}, {pipeline_mode = #tpu.pipeline_mode<synchronous>, transform_indices = @transform_1, window_bounds = array<i64: 1, 32>}, {pipeline_mode = #tpu.pipeline_mode<synchronous>, transform_indices = @transform_2, window_bounds = array<i64: 1, 32>}, {transform_indices = @transform_3, window_bounds = array<i64: 32, 128>}, {transform_indices = @transform_4, window_bounds = array<i64: 16, 128>}]} {
    %c0_i32 = arith.constant 0 : i32
    %0 = arith.cmpi eq, %arg1, %c0_i32 : i32
    %1 = arith.extui %0 : i1 to i32
    %c0_i32_0 = arith.constant 0 : i32
    %2 = arith.cmpi ne, %1, %c0_i32_0 : i32
    scf.if %2 {
      %c0_6 = arith.constant 0 : index
      %c0_7 = arith.constant 0 : index
      %7 = vector.load %arg2[%c0_6, %c0_7] : memref<16x32xf32, #tpu.memory_space<vmem>>, vector<16x32xf32>
      %c0_8 = arith.constant 0 : index
      %c0_9 = arith.constant 0 : index
      %8 = vector.load %arg3[%c0_8, %c0_9] : memref<1x32xf32, #tpu.memory_space<vmem>>, vector<1x32xf32>
      %c0_10 = arith.constant 0 : index
      %c0_11 = arith.constant 0 : index
      %9 = vector.load %arg4[%c0_10, %c0_11] : memref<1x32xf32, #tpu.memory_space<vmem>>, vector<1x32xf32>
      %cst_12 = arith.constant dense<0.000000e+00> : vector<16xf32>
      %10 = vector.multi_reduction <add>, %7, %cst_12 [1] : vector<16x32xf32> to vector<16xf32>
      %11 = vector.shape_cast %10 : vector<16xf32> to vector<16x1xf32>
      %cst_13 = arith.constant 3.200000e+01 : f32
      %12 = vector.broadcast %cst_13 : f32 to vector<16x1xf32>
      %13 = arith.divf %11, %12 : vector<16x1xf32>
      %14 = vector.broadcast %13 : vector<16x1xf32> to vector<16x32xf32>
      %15 = arith.subf %7, %14 : vector<16x32xf32>
      %16 = arith.mulf %15, %15 : vector<16x32xf32>
      %cst_14 = arith.constant dense<0.000000e+00> : vector<16xf32>
      %17 = vector.multi_reduction <add>, %16, %cst_14 [1] : vector<16x32xf32> to vector<16xf32>
      %18 = vector.shape_cast %17 : vector<16xf32> to vector<16x1xf32>
      %cst_15 = arith.constant 3.200000e+01 : f32
      %19 = vector.broadcast %cst_15 : f32 to vector<16x1xf32>
      %20 = arith.divf %18, %19 : vector<16x1xf32>
      %21 = vector.broadcast %13 : vector<16x1xf32> to vector<16x32xf32>
      %22 = arith.subf %7, %21 : vector<16x32xf32>
      %cst_16 = arith.constant 9.99999974E-6 : f32
      %23 = vector.broadcast %cst_16 : f32 to vector<16x1xf32>
      %24 = arith.addf %20, %23 : vector<16x1xf32>
      %25 = math.rsqrt %24 : vector<16x1xf32>
      %26 = vector.broadcast %25 : vector<16x1xf32> to vector<16x32xf32>
      %27 = arith.mulf %22, %26 : vector<16x32xf32>
      %28 = vector.broadcast %8 : vector<1x32xf32> to vector<16x32xf32>
      %29 = arith.mulf %27, %28 : vector<16x32xf32>
      %30 = vector.broadcast %9 : vector<1x32xf32> to vector<16x32xf32>
      %31 = arith.addf %29, %30 : vector<16x32xf32>
      %32 = arith.truncf %31 : vector<16x32xf32> to vector<16x32xbf16>
      %c0_17 = arith.constant 0 : index
      %c0_18 = arith.constant 0 : index
      %33 = vector.load %arg7[%c0_17, %c0_18] : memref<16x32xbf16, #tpu.memory_space<vmem>>, vector<16x32xbf16>
      tpu.vector_store %arg7[%c0_17, %c0_18], %32 {strides = array<i32>} : memref<16x32xbf16, #tpu.memory_space<vmem>>, vector<16x32xbf16>,
    } else {
    }
    %c0 = arith.constant 0 : index
    %c0_1 = arith.constant 0 : index
    %3 = vector.load %arg7[%c0, %c0_1] : memref<16x32xbf16, #tpu.memory_space<vmem>>, vector<16x32xbf16>
    %c0_2 = arith.constant 0 : index
    %c0_3 = arith.constant 0 : index
    %4 = vector.load %arg5[%c0_2, %c0_3] : memref<32x128xbf16, #tpu.memory_space<vmem>>, vector<32x128xbf16>
    %cst = arith.constant dense<0.000000e+00> : vector<16x128xf32>
    %5 = tpu.matmul %3, %4, %cst {dimension_numbers = #tpu.dot_dimension_numbers<[1], [0], [0], [1], [0, 0, 1, 1], [], []>} : vector<16x32xbf16>, vector<32x128xbf16>, vector<16x128xf32> -> vector<16x128xf32>
    %c0_4 = arith.constant 0 : index
    %c0_5 = arith.constant 0 : index
    %6 = vector.load %arg6[%c0_4, %c0_5] : memref<16x128xf32, #tpu.memory_space<vmem>>, vector<16x128xf32>
    tpu.vector_store %arg6[%c0_4, %c0_5], %5 {strides = array<i32>} : memref<16x128xf32, #tpu.memory_space<vmem>>, vector<16x128xf32>,
    return
  }
  func.func @transform_0(%arg0: i32, %arg1: i32) -> (i32, i32) {
    %c0_i32 = arith.constant 0 : i32
    %c0_i32_0 = arith.constant 0 : i32
    return %arg0, %c0_i32 : i32, i32
  }
  func.func @transform_1(%arg0: i32, %arg1: i32) -> (i32, i32) {
    %c0_i32 = arith.constant 0 : i32
    %c0_i32_0 = arith.constant 0 : i32
    %c0_i32_1 = arith.constant 0 : i32
    return %c0_i32, %c0_i32_0 : i32, i32
  }
  func.func @transform_2(%arg0: i32, %arg1: i32) -> (i32, i32) {
    %c0_i32 = arith.constant 0 : i32
    %c0_i32_0 = arith.constant 0 : i32
    %c0_i32_1 = arith.constant 0 : i32
    return %c0_i32, %c0_i32_0 : i32, i32
  }
  func.func @transform_3(%arg0: i32, %arg1: i32) -> (i32, i32) {
    %c0_i32 = arith.constant 0 : i32
    %c0_i32_0 = arith.constant 0 : i32
    return %c0_i32, %arg1 : i32, i32
  }
  func.func @transform_4(%arg0: i32, %arg1: i32) -> (i32, i32) {
    %c0_i32 = arith.constant 0 : i32
    return %arg0, %arg1 : i32, i32
  }
}

</mosaic_0001>

<bundles_post_ra>
// kernel: gpt_forward.5
= control target key start
LH: loop header
LB: loop body
LE: loop exit
PB: predicated region body
PF: predicated region fallthrough
CT: control target
= control target key end

     0   :  { %vm26_vm0 = vcmask 261120   ;;  %v164_v15 = vmov 0.0   ;;  %vm165_vm1 = vmmov 0   ;;  %s221_s0 = inlined_call_operand.vmem [shape: f32[16,32], index: 0, kind: input, shape index: {}]   ;;  %s222_s3 = inlined_call_operand.vmem [shape: bf16[32,128], index: 3, kind: input, shape index: {}]   ;;  %s223_s1 = inlined_call_operand.vmem [shape: f32[1,32], index: 1, kind: input, shape index: {}]   ;;  %s224_s2 = inlined_call_operand.vmem [shape: f32[1,32], index: 2, kind: input, shape index: {}]   ;;  %s225_s4 = inlined_call_operand.vmem [shape: f32[16,128], index: 4, kind: output, shape index: {}]  }
   0x1   :  { %v22_v0 = vld [vmem:[%s221_s0] sm:$0xff]  ;;  %v23_v1 = vld [vmem:[%s221_s0 + $0x8] sm:$0xff]  ;;  %148 = vmatprep.subr.bf16.mxu0 %v164_v15  ;;  %152 = vmatprep.mubr.msk.bf16.mxu0 %vm165_vm1, %v164_v15 }
   0x2   :  { %v27_v2 = vsel %vm26_vm0, %v22_v0, 0.0  ;;  %v30_v3 = vsel %vm26_vm0, %v23_v1, 0.0  ;;  %v158_v14 = vld [vmem:[%s222_s3] sm:$0xff]   ;;  %v159_v16 = vld [vmem:[%s222_s3 + $0x8] sm:$0xff]  }
   0x3   :  { %28 = vadd.xlane.f32.xlu0 %v27_v2  ;;  %149 = vmatpush3.bf16.msra.mxu0 %v158_v14  ;;  %v140_v25 = vld [vmem:[%s223_s1] ss:$0 sm:$0xff] }
   0x4   :  { %150 = vmatprep.subr.bf16.mxu0 %v164_v15  ;;  %v141_v29 = vld [vmem:[%s224_s2] ss:$0 sm:$0xff] }
   0x7   :  { %31 = vadd.xlane.f32.xlu0 %v30_v3  ;;  %151 = vmatpush3.bf16.msra.mxu0 %v159_v16 }
  0x90   :  { %v29_v4 = vpop.xlane.xlu0 %28 }
  0x91   :  { %v34_v5 = vmul.f32 0.03125, %v29_v4 }
  0x93   :  { %v36_v6 = vsub.f32 %v22_v0, %v34_v5 }
  0x94   :  { %v32_v7 = vpop.xlane.xlu0 %31 }
  0x95   :  { %v35_v8 = vmul.f32 0.03125, %v32_v7  ;;  %v38_v9 = vmul.f32 %v36_v6, %v36_v6 }
  0x97   :  { %v37_v10 = vsub.f32 %v23_v1, %v35_v8  ;;  %v40_v11 = vsel %vm26_vm0, %v38_v9, 0.0 }
  0x98   :  { %41 = vadd.xlane.f32.xlu1 %v40_v11 }
  0x99   :  { %v39_v12 = vmul.f32 %v37_v10, %v37_v10 }
  0x9b   :  { %v43_v13 = vsel %vm26_vm0, %v39_v12, 0.0 }
  0x9c   :  { %44 = vadd.xlane.f32.xlu1 %v43_v13 }
 0x125   :  { %v42_v17 = vpop.xlane.xlu1 %41 }
 0x126   :  { %v46_v18 = vmul.f32 0.03125, %v42_v17 }
 0x128   :  { %v48_v19 = vadd.f32 1e-05, %v46_v18 }
 0x129   :  { %v45_v20 = vpop.xlane.xlu1 %44 }
 0x12a   :  { %160 = vrsqrt.f32 %v48_v19  ;;  %v47_v21 = vmul.f32 0.03125, %v45_v20 }
 0x12c   :  { %v49_v22 = vadd.f32 1e-05, %v47_v21 }
 0x12e   :  { %162 = vrsqrt.f32 %v49_v22 }
 0x134   :  { %v161_v23 = vpop.eup %160 }
 0x135   :  { %v52_v24 = vmul.f32 %v161_v23, %v36_v6 }
 0x137   :  { %v60_v27 = vmul.f32 %v140_v25, %v52_v24 }
 0x138   :  { %v163_v26 = vpop.eup %162 }
 0x139   :  { %v53_v28 = vmul.f32 %v163_v26, %v37_v10  ;;  %v68_v31 = vadd.f32 %v141_v29, %v60_v27 }
 0x13b   :  { %v61_v30 = vmul.f32 %v140_v25, %v53_v28 }
 0x13d   :  { %v69_v32 = vadd.f32 %v141_v29, %v61_v30 }
 0x13f   :  { %v70_v33 = vpack.c.bf16 %v69_v32, %v68_v31 }
 0x141   :  { %71 = vst.msk [vmem:[#allocation2] sm:$0xff] %vm26_vm0, %v70_v33 }
 0x148   :  { %v72_v34 = vld [vmem:[#allocation2] sm:$0xff] }
 0x149   :  { %153 = vmatmul.mubr.msk.bf16.vlgmr.msra.gmra.mrb[0].mxu0 %vm26_vm0, %v72_v34 }
 0x21c   :  { %v127_v35 = vpop.f32.mrb[0].mxu0 }
 0x21d   :  { %134 = vst [vmem:[%s225_s4] sm:$0xff] %v127_v35  ;;  %v154_v36 = vpop.f32.mrb[1].mxu0 }
 0x21e   :  { %v130_v37 = vpop.f32.mrb[2].mxu0 }
 0x21f   :  { %135 = vst [vmem:[%s225_s4 + $0x8] sm:$0xff] %v130_v37  ;;  %v155_v38 = vpop.f32.mrb[3].mxu0 }

// kernel: gpt_forward.3
= control target key start
LH: loop header
LB: loop body
LE: loop exit
PB: predicated region body
PF: predicated region fallthrough
CT: control target
= control target key end

     0   :  { %s1796_s25 = smov 0   ;;  %s2020_s0 = inlined_call_operand.vmem [shape: f32[2,8,32], index: 0, kind: input, shape index: {}]   ;;  %s2021_s1 = inlined_call_operand.vmem [shape: f32[1,32], index: 1, kind: input, shape index: {}]   ;;  %s2022_s2 = inlined_call_operand.vmem [shape: f32[1,32], index: 2, kind: input, shape index: {}]   ;;  %s2023_s3 = inlined_call_operand.vmem [shape: bf16[32,96], index: 3, kind: input, shape index: {}]   ;;  %s2024_s4 = inlined_call_operand.vmem [shape: f32[1,96], index: 4, kind: input, shape index: {}]   ;;  %s2025_s5 = inlined_call_operand.vmem [shape: bf16[32,32], index: 5, kind: input, shape index: {}]   ;;  %s2026_s6 = inlined_call_operand.vmem [shape: f32[1,32], index: 6, kind: input, shape index: {}]   ;;  %s2027_s7 = inlined_call_operand.vmem [shape: f32[1,32], index: 7, kind: input, shape index: {}]   ;;  %s2028_s8 = inlined_call_operand.vmem [shape: f32[1,32], index: 8, kind: input, shape index: {}]   ;;  %s2029_s9 = inlined_call_operand.vmem [shape: bf16[32,128], index: 9, kind: input, shape index: {}]   ;;  %s2030_s10 = inlined_call_operand.vmem [shape: f32[1,128], index: 10, kind: input, shape index: {}]   ;;  %s2031_s11 = inlined_call_operand.vmem [shape: bf16[128,32], index: 11, kind: input, shape index: {}]   ;;  %s2032_s12 = inlined_call_operand.vmem [shape: f32[1,32], index: 12, kind: input, shape index: {}]   ;;  %s2033_s13 = inlined_call_operand.vmem [shape: f32[2,8,32], index: 13, kind: output, shape index: {}]  }
   0x1 LB: > { %s1458_s26 = sadd.s32 4294967295, %s1710_s25   ;;  %p1462_p0 = scmp.ge.s32.totalorder %s1710_s25, 1  ;;  %s1710_s25 = sphi %s1796_s25, %s23_s25  }
   0x2   : > { %p386_p1 = scmp.lt.s32.totalorder %s1710_s25, 3 }
   0x4   : > { %p387_p2 = pnand %p1462_p0, %p386_p1 }
   0x5   : > { %p428_p3 = scmp.lt.s32.totalorder (!%p387_p2), %s1458_s26, 1  ;;  %vm440_vm0 = vcmask (!%p387_p2), 261120   ;;  %v1670_v7 = vld [vmem:[%s2023_s3] sm:$0xff] (!%p387_p2)   ;;  %v1712_v8 = vmov (!%p387_p2), 0.0   ;;  %vm1713_vm1 = vmmov (!%p387_p2), 0   ;;  %v1671_v9 = vld [vmem:[%s2023_s3 + $0x8] sm:$0xff] (!%p387_p2)   ;;  %v539_v33 = vlaneseq (!%p387_p2) }
   0x6   : > { %390 = sbr.rel (%p387_p2) target bundleno = 4226 (0x1082), region = 72  ;;  %1540 = vmatprep.subr.bf16.mxu1 (!%p387_p2), %v1712_v8  ;;  %1544 = vmatprep.mubr.msk.bf16.mxu1 (!%p387_p2), %vm1713_vm1, %v1712_v8  ;;  %v1465_v14 = vld [vmem:[%s2021_s1] ss:$0 sm:$0xff] (!%p387_p2)  ;;  %s1714_s24 = smov (!%p387_p2), 64   ;;  %vm548_vm2 = vcmask (!%p387_p2), 64512   ;;  %vm612_vm3 = vcmask (!%p387_p2), 1043456  }
   0x7   : > { %1541 = vmatpush3.bf16.msra.mxu1 (!%p387_p2), %v1670_v7  ;;  %1566 = vmatprep.subr.bf16.mxu0 (!%p387_p2), %v1712_v8  ;;  %v1466_v16 = vld [vmem:[%s2022_s2] ss:$0 sm:$0xff] (!%p387_p2)  ;;  %s1715_s28 = smov (!%p387_p2), 96   ;;  %v540_v34 = vshrl.u32 (!%p387_p2), %v539_v33, 7  ;;  %v542_v35 = vand.u32 (!%p387_p2), 127, %v539_v33  ;;  %s1717_s29 = smov (!%p387_p2), 88  }
   0x8   : > { %1542 = vmatprep.subr.bf16.mxu1 (!%p387_p2), %v1712_v8  ;;  %1568 = vmatprep.mubr.msk.bf16.mxu0 (!%p387_p2), %vm1713_vm1, %v1712_v8  ;;  %v1467_v20 = vld [vmem:[%s2024_s4] ss:$0 sm:$0xff] (!%p387_p2)  ;;  %v1716_v36 = vmov (!%p387_p2), -1e+30   ;;  %s1719_s14 = smov (!%p387_p2), 56   ;;  %s1720_s15 = smov (!%p387_p2), 80  }
   0x9   : > { %vm543_vm4 = vcmp.ge.s32.totalorder (!%p387_p2), %v540_v34, %v542_v35  ;;  %s1721_s16 = smov (!%p387_p2), 112   ;;  %s1722_s17 = smov (!%p387_p2), 48  }
   0xa   : > { %v1858_v37 = vsel (!%p387_p2), %vm543_vm4, 0.0, %v1716_v36  ;;  %s1723_s22 = smov (!%p387_p2), 72   ;;  %s1724_s23 = smov (!%p387_p2), 104  }
   0xb   : > { %1543 = vmatpush3.bf16.msra.mxu1 (!%p387_p2), %v1671_v9 }
   0xc   : > { %1548 = vmatprep.subr.bf16.mxu1 (!%p387_p2), %v1712_v8 }
   0xd   : > { %s2035_s26 = smov (!%p428_p3, %s1458_s26), 1 }
   0xe   : > { %s1463_s27 = sshll.u32 %s2035_s26, 3 }
   0xf   : > { %s431_s30 = scalar_lea.vmem %s2020_s0, %s1463_s27  ;;  %s435_s19 = scalar_lea.vmem %s2033_s13, %s1463_s27 }
  0x10   : > { %v1812_v0 = vld [vmem:[%s431_s30] sm:$0xff]  ;;  %s1718_s30 = smov 120  }
  0x11   : > { %v441_v1 = vsel %vm440_vm0, %v1812_v0, 0.0 }
  0x12   : > { %442 = vadd.xlane.f32.xlu0 %v441_v1 }
  0x9f   : > { %v443_v2 = vpop.xlane.xlu0 %442 }
  0xa0   : > { %v445_v3 = vmul.f32 0.03125, %v443_v2 }
  0xa2   : > { %v446_v4 = vsub.f32 %v1812_v0, %v445_v3 }
  0xa4   : > { %v447_v5 = vmul.f32 %v446_v4, %v446_v4 }
  0xa6   : > { %v448_v6 = vsel %vm440_vm0, %v447_v5, 0.0 }
  0xa7   : > { %449 = vadd.xlane.f32.xlu0 %v448_v6 }
 0x134   : > { %v450_v10 = vpop.xlane.xlu0 %449 }
 0x135   : > { %v451_v11 = vmul.f32 0.03125, %v450_v10 }
 0x137   : > { %v452_v12 = vadd.f32 1e-05, %v451_v11  ;;  %v770_v11 = vld [vmem:[%s2025_s5 + $0x4] sm:$0xf] }
 0x139   : > { %1682 = vrsqrt.f32 %v452_v12  ;;  %v775_v12 = vsel %vm612_vm3, %v770_v11, 0 }
 0x143   : > { %v1683_v13 = vpop.eup %1682 }
 0x144   : > { %v454_v15 = vmul.f32 %v1683_v13, %v446_v4 }
 0x146   : > { %v461_v17 = vmul.f32 %v1465_v14, %v454_v15  ;;  %v657_v15 = vld [vmem:[%s2025_s5] sm:$0xf] }
 0x148   : > { %v468_v18 = vadd.f32 %v1466_v16, %v461_v17 }
 0x14a   : > { %v469_v19 = vpack.c.bf16 %v468_v18, %v468_v18  ;;  %v821_v18 = vsel %vm612_vm3, %v657_v15, 0 }
 0x14c   : > { %1545 = vmatmul.mubr.msk.bf16.vlgmr.msra.gmra.mrb[0].mxu1 %vm440_vm0, %v469_v19 }
 0x14d   : > { %1550 = vmatprep.mubr.msk.bf16.mxu1 %vm1713_vm1, %v1712_v8 }
 0x21f   : > { %v530_v21 = vpop.f32.mrb[0].mxu1 }
 0x220   : > { %v531_v22 = vadd.f32 %v1467_v20, %v530_v21  ;;  %v1546_v23 = vpop.f32.mrb[1].mxu1 }
 0x221   : > { %v533_v24 = vpop.f32.mrb[2].mxu1 }
 0x222   : > { %v1844_v25 = vpack.c.bf16 %v531_v22, %v531_v22  ;;  %v1547_v26 = vpop.f32.mrb[3].mxu1  ;;  %v536_v29 = vmul.f32 0.35355338, %v531_v22 }
 0x224   : > { %607 = vrot.lane.b32.xlu0 %v1844_v25, %s1714_s24  ;;  %546 = vrot.lane.b32.xlu1 %v1844_v25, %s1715_s28  ;;  %v1850_v31 = vpack.c.bf16 %v536_v29, %v536_v29 }
 0x296   : > { %v547_v27 = vpop.permute.xlu1 %546  ;;  %v608_v30 = vpop.permute.xlu0 %607 }
 0x297   : > { %v553_v28 = vsel %vm548_vm2, %v547_v27, 0  ;;  %v614_v32 = vsel %vm612_vm3, %v608_v30, 0 }
 0x298   : > { %1549 = vmatpush3.bf16.xpose.msra.mxu1 %v553_v28 }
 0x299   : > { %1554 = vmatprep.subr.bf16.mxu1 %v1712_v8 }
 0x29f   : > { %1551 = vmatmul.mubr.msk.bf16.vlgmr.msra.gmra.mrb[4].mxu1 %vm548_vm2, %v1850_v31 }
 0x2a0   : > { %1555 = vmatpush3.bf16.msra.mxu1 %v614_v32  ;;  %1556 = vmatprep.mubr.msk.bf16.mxu1 %vm1713_vm1, %v1712_v8 }
 0x2a1   : > { %1560 = vmatprep.subr.bf16.mxu1 %v1712_v8 }
 0x372   : > { %v589_v38 = vpop.f32.mrb[4].mxu1 }
 0x373   : > { %v590_v39 = vadd.f32 %v589_v38, %v1858_v37  ;;  %v1552_v40 = vpop.f32.mrb[5].mxu1 }
 0x374   : > { %v592_v41 = vpop.f32.mrb[6].mxu1 }
 0x375   : > { %v1553_v42 = vpop.f32.mrb[7].mxu1  ;;  %v595_v43 = vsel %vm548_vm2, %v590_v39, -inf }
 0x376   : > { %596 = vmax.xlane.f32.xlu1 %v595_v43 }
 0x403   : > { %v597_v44 = vpop.xlane.xlu1 %596 }
 0x404   : > { %v598_v45 = vsub.f32 %v590_v39, %v597_v44 }
 0x406   : > { %v599_v46 = vmul.f32 1.442695, %v598_v45 }
 0x408   : > { %1684 = vpow2.f32 %v599_v46 }
 0x412   : > { %v1685_v47 = vpop.eup %1684 }
 0x413   : > { %v601_v48 = vsel %vm548_vm2, %v1685_v47, 0.0 }
 0x414   : > { %602 = vadd.xlane.f32.xlu0 %v601_v48 }
 0x42a   : > { %661 = vrot.lane.b32.xlu0 %v1844_v25, %s1717_s29  ;;  %s1725_s29 = smov 40  }
 0x42e   : > { %659 = vrot.lane.b32.xlu0 %v1850_v31, %s1718_s30 }
 0x4a1   : > { %v603_v49 = vpop.xlane.xlu0 %602 }
 0x4a2   : > { %1686 = vrcp.f32 %v603_v49 }
 0x4a5   : > { %v662_v52 = vpop.permute.xlu0 %661 }
 0x4a6   : > { %v667_v54 = vsel %vm548_vm2, %v662_v52, 0 }
 0x4a9   : > { %v660_v55 = vpop.permute.xlu0 %659 }
 0x4ac   : > { %v1687_v50 = vpop.eup %1686 }
 0x4ad   : > { %v605_v51 = vmul.f32 %v1687_v50, %v1685_v47 }
 0x4af   : > { %v606_v53 = vpack.c.bf16 %v605_v51, %v605_v51 }
 0x4b1   : > { %1557 = vmatmul.mubr.msk.bf16.vlgmr.msra.gmra.mrb[8].mxu1 %vm548_vm2, %v606_v53 }
 0x4b2   : > { %1561 = vmatpush3.bf16.xpose.msra.mxu1 %v667_v54  ;;  %1562 = vmatprep.mubr.msk.bf16.mxu1 %vm1713_vm1, %v1712_v8 }
 0x4b3   : > { %1572 = vmatprep.subr.bf16.mxu1 %v1712_v8 }
 0x4b9   : > { %1563 = vmatmul.mubr.msk.bf16.vlgmr.msra.gmra.mrb[12].mxu1 %vm548_vm2, %v660_v55 }
 0x4ba   : > { %1574 = vmatprep.mubr.msk.bf16.mxu1 %vm1713_vm1, %v1712_v8  ;;  %1573 = vmatpush3.bf16.msra.mxu1 %v775_v12 }
 0x4bb   : > { %1584 = vmatprep.subr.bf16.mxu1 %v1712_v8 }
 0x584   : > { %v650_v56 = vpop.f32.mrb[8].mxu1 }
 0x585   : > { %v1558_v57 = vpop.f32.mrb[9].mxu1  ;;  %v656_v20 = vpack.c.bf16 %v650_v56, %v650_v56 }
 0x586   : > { %v653_v58 = vpop.f32.mrb[10].mxu1 }
 0x587   : > { %v1559_v59 = vpop.f32.mrb[11].mxu1 }
 0x58c   : > { %v703_v60 = vpop.f32.mrb[12].mxu1 }
 0x58d   : > { %v704_v61 = vadd.f32 %v703_v60, %v1858_v37  ;;  %v1564_v62 = vpop.f32.mrb[13].mxu1 }
 0x58e   : > { %v706_v63 = vpop.f32.mrb[14].mxu1 }
 0x58f   : > { %v1565_v1 = vpop.f32.mrb[15].mxu1  ;;  %v709_v2 = vsel %vm548_vm2, %v704_v61, -inf }
 0x590   : > { %710 = vmax.xlane.f32.xlu1 %v709_v2 }
 0x5a1   : > { %721 = vrot.lane.b32.xlu1 %v1844_v25, %s1719_s14 }
 0x5a5   : > { %865 = vrot.lane.b32.xlu1 %v1844_v25, %s1720_s15 }
 0x5a9   : > { %863 = vrot.lane.b32.xlu1 %v1850_v31, %s1721_s16 }
 0x61d   : > { %v711_v3 = vpop.xlane.xlu1 %710 }
 0x61e   : > { %v712_v4 = vsub.f32 %v704_v61, %v711_v3 }
 0x620   : > { %v713_v5 = vmul.f32 1.442695, %v712_v4 }
 0x621   : > { %v722_v6 = vpop.permute.xlu1 %721 }
 0x622   : > { %1688 = vpow2.f32 %v713_v5  ;;  %v727_v7 = vsel %vm612_vm3, %v722_v6, 0 }
 0x623   : > { %1567 = vmatpush3.bf16.msra.mxu0 %v727_v7 }
 0x624   : > { %1578 = vmatprep.subr.bf16.mxu0 %v1712_v8 }
 0x625   : > { %v866_v22 = vpop.permute.xlu1 %865 }
 0x626   : > { %v871_v28 = vsel %vm548_vm2, %v866_v22, 0 }
 0x629   : > { %v864_v33 = vpop.permute.xlu1 %863 }
 0x62c   : > { %v1689_v9 = vpop.eup %1688 }
 0x62d   : > { %v715_v10 = vsel %vm548_vm2, %v1689_v9, 0.0 }
 0x62e   : > { %716 = vadd.xlane.f32.xlu0 %v715_v10 }
 0x644   : > { %925 = vrot.lane.b32.xlu0 %v1844_v25, %s1722_s17 }
 0x6bb   : > { %v717_v13 = vpop.xlane.xlu0 %716 }
 0x6bc   : > { %1690 = vrcp.f32 %v717_v13 }
 0x6bf   : > { %v926_v19 = vpop.permute.xlu0 %925 }
 0x6c0   : > { %v931_v21 = vsel %vm612_vm3, %v926_v19, 0 }
 0x6c6   : > { %v1691_v14 = vpop.eup %1690 }
 0x6c7   : > { %v719_v16 = vmul.f32 %v1691_v14, %v1689_v9 }
 0x6c9   : > { %v720_v17 = vpack.c.bf16 %v719_v16, %v719_v16  ;;  %v1133_v16 = vld [vmem:[%s2025_s5 + $0xc] sm:$0xf] }
 0x6cb   : > { %1569 = vmatmul.mubr.msk.bf16.vlgmr.msra.gmra.mrb[0].mxu0 %vm548_vm2, %v720_v17 }
 0x6cc   : > { %1579 = vmatpush3.bf16.msra.mxu0 %v821_v18  ;;  %1580 = vmatprep.mubr.msk.bf16.mxu0 %vm1713_vm1, %v1712_v8 }
 0x6cd   : > { %1590 = vmatprep.subr.bf16.mxu0 %v1712_v8 }
 0x6d3   : > { %1581 = vmatmul.mubr.msk.bf16.vlgmr.msra.gmra.mrb[4].mxu0 %vm548_vm2, %v656_v20 }
 0x6d4   : > { %1591 = vmatpush3.bf16.msra.mxu0 %v931_v21  ;;  %1592 = vmatprep.mubr.msk.bf16.mxu0 %vm1713_vm1, %v1712_v8 }
 0x6d5   : > { %1602 = vmatprep.subr.bf16.mxu0 %v1712_v8 }
 0x79e   : > { %v763_v23 = vpop.f32.mrb[0].mxu0 }
 0x79f   : > { %v769_v24 = vpack.c.bf16 %v763_v23, %v763_v23  ;;  %v1570_v26 = vpop.f32.mrb[1].mxu0 }
 0x7a0   : > { %v766_v27 = vpop.f32.mrb[2].mxu0 }
 0x7a1   : > { %v1571_v29 = vpop.f32.mrb[3].mxu0  ;;  %1575 = vmatmul.mubr.msk.bf16.vlgmr.msra.gmra.mrb[16].mxu1 %vm548_vm2, %v769_v24 }
 0x7a2   : > { %1585 = vmatpush3.bf16.xpose.msra.mxu1 %v871_v28  ;;  %1586 = vmatprep.mubr.msk.bf16.mxu1 %vm1713_vm1, %v1712_v8 }
 0x7a3   : > { %1596 = vmatprep.subr.bf16.mxu1 %v1712_v8 }
 0x7a6   : > { %v857_v30 = vpop.f32.mrb[4].mxu0 }
 0x7a7   : > { %v1582_v32 = vpop.f32.mrb[5].mxu0 }
 0x7a8   : > { %v860_v34 = vpop.f32.mrb[6].mxu0 }
 0x7a9   : > { %v1583_v35 = vpop.f32.mrb[7].mxu0  ;;  %1587 = vmatmul.mubr.msk.bf16.vlgmr.msra.gmra.mrb[20].mxu1 %vm548_vm2, %v864_v33 }
 0x7aa   : > { %1598 = vmatprep.mubr.msk.bf16.mxu1 %vm1713_vm1, %v1712_v8 }
 0x874   : > { %v811_v36 = vpop.f32.mrb[16].mxu1 }
 0x875   : > { %v1908_v38 = vadd.f32 %v857_v30, %v811_v36  ;;  %v1576_v39 = vpop.f32.mrb[17].mxu1  ;;  %v1483_v36 = vld [vmem:[%s2026_s6] ss:$0 sm:$0xff] }
 0x876   : > { %v814_v40 = vpop.f32.mrb[18].mxu1 }
 0x877   : > { %v1577_v41 = vpop.f32.mrb[19].mxu1 }
 0x87c   : > { %v907_v42 = vpop.f32.mrb[20].mxu1 }
 0x87d   : > { %v908_v43 = vadd.f32 %v907_v42, %v1858_v37  ;;  %v1588_v44 = vpop.f32.mrb[21].mxu1 }
 0x87e   : > { %v910_v45 = vpop.f32.mrb[22].mxu1 }
 0x87f   : > { %v1589_v46 = vpop.f32.mrb[23].mxu1  ;;  %v913_v47 = vsel %vm548_vm2, %v908_v43, -inf }
 0x880   : > { %914 = vmax.xlane.f32.xlu1 %v913_v47 }
 0x90d   : > { %v915_v48 = vpop.xlane.xlu1 %914 }
 0x90e   : > { %v916_v49 = vsub.f32 %v908_v43, %v915_v48  ;;  %v1672_v48 = vld [vmem:[%s2029_s9] sm:$0xff]  }
 0x910   : > { %v917_v50 = vmul.f32 1.442695, %v916_v49  ;;  %v1674_v49 = vld [vmem:[%s2031_s11] sm:$0xff]  }
 0x912   : > { %1692 = vpow2.f32 %v917_v50  ;;  %v1675_v50 = vld [vmem:[%s2031_s11 + $0x8] sm:$0xff]  }
 0x91c   : > { %v1693_v51 = vpop.eup %1692 }
 0x91d   : > { %v919_v52 = vsel %vm548_vm2, %v1693_v51, 0.0 }
 0x91e   : > { %920 = vadd.xlane.f32.xlu0 %v919_v52 }
 0x934   : > { %1024 = vrot.lane.b32.xlu0 %v1844_v25, %s1723_s22 }
 0x938   : > { %1022 = vrot.lane.b32.xlu0 %v1850_v31, %s1724_s23  ;;  %v974_v31 = vld [vmem:[%s2025_s5 + $0x8] sm:$0xf] }
 0x939   : > { %v979_v60 = vsel %vm612_vm3, %v974_v31, 0 }
 0x93a   : > { %1597 = vmatpush3.bf16.msra.mxu1 %v979_v60 }
 0x93b   : > { %1608 = vmatprep.subr.bf16.mxu1 %v1712_v8 }
 0x9ab   : > { %v921_v53 = vpop.xlane.xlu0 %920 }
 0x9ac   : > { %1694 = vrcp.f32 %v921_v53 }
 0x9af   : > { %v1025_v56 = vpop.permute.xlu0 %1024 }
 0x9b0   : > { %v1030_v58 = vsel %vm548_vm2, %v1025_v56, 0  ;;  %v1484_v56 = vld [vmem:[%s2027_s7] ss:$0 sm:$0xff] }
 0x9b3   : > { %v1023_v59 = vpop.permute.xlu0 %1022 }
 0x9b6   : > { %v1695_v54 = vpop.eup %1694 }
 0x9b7   : > { %v923_v55 = vmul.f32 %v1695_v54, %v1693_v51  ;;  %v1676_v51 = vld [vmem:[%s2031_s11 + $0x10] sm:$0xff]  }
 0x9b9   : > { %v924_v57 = vpack.c.bf16 %v923_v55, %v923_v55 }
 0x9bb   : > { %1593 = vmatmul.mubr.msk.bf16.vlgmr.msra.gmra.mrb[8].mxu0 %vm548_vm2, %v924_v57 }
 0x9bc   : > { %1603 = vmatpush3.bf16.xpose.msra.mxu0 %v1030_v58  ;;  %1604 = vmatprep.mubr.msk.bf16.mxu0 %vm1713_vm1, %v1712_v8  ;;  %v1485_v58 = vld [vmem:[%s2028_s8] ss:$0 sm:$0xff] }
 0x9bd   : > { %1614 = vmatprep.subr.bf16.mxu0 %v1712_v8 }
 0x9c3   : > { %1605 = vmatmul.mubr.msk.bf16.vlgmr.msra.gmra.mrb[12].mxu0 %vm548_vm2, %v1023_v59 }
 0x9c4   : > { %1616 = vmatprep.mubr.msk.bf16.mxu0 %vm1713_vm1, %v1712_v8 }
 0xa8e   : > { %v967_v61 = vpop.f32.mrb[8].mxu0 }
 0xa8f   : > { %v973_v62 = vpack.c.bf16 %v967_v61, %v967_v61  ;;  %v1594_v63 = vpop.f32.mrb[9].mxu0  ;;  %v1677_v61 = vld [vmem:[%s2031_s11 + $0x18] sm:$0xff]  }
 0xa90   : > { %v970_v1 = vpop.f32.mrb[10].mxu0  ;;  %v1679_v63 = vld [vmem:[%s2031_s11 + $0x28] sm:$0xff]  }
 0xa91   : > { %v1595_v2 = vpop.f32.mrb[11].mxu0  ;;  %1599 = vmatmul.mubr.msk.bf16.vlgmr.msra.gmra.mrb[24].mxu1 %vm548_vm2, %v973_v62  ;;  %v1678_v62 = vld [vmem:[%s2031_s11 + $0x20] sm:$0xff]   ;;  %v1680_v1 = vld [vmem:[%s2031_s11 + $0x30] sm:$0xff]  }
 0xa92   : > { %1610 = vmatprep.mubr.msk.bf16.mxu1 %vm1713_vm1, %v1712_v8  ;;  %v1681_v2 = vld [vmem:[%s2031_s11 + $0x38] sm:$0xff]  }
 0xa96   : > { %v1066_v3 = vpop.f32.mrb[12].mxu0 }
 0xa97   : > { %v1067_v4 = vadd.f32 %v1066_v3, %v1858_v37  ;;  %v1606_v5 = vpop.f32.mrb[13].mxu0  ;;  %v1486_v3 = vld [vmem:[%s2030_s10] ss:$0 sm:$0xff] }
 0xa98   : > { %v1069_v6 = vpop.f32.mrb[14].mxu0 }
 0xa99   : > { %v1607_v7 = vpop.f32.mrb[15].mxu0  ;;  %v1072_v9 = vsel %vm548_vm2, %v1067_v4, -inf }
 0xa9a   : > { %1073 = vmax.xlane.f32.xlu1 %v1072_v9 }
 0xaab   : > { %1084 = vrot.lane.b32.xlu1 %v1844_v25, %s1725_s29  ;;  %v1138_v25 = vsel %vm612_vm3, %v1133_v16, 0 }
 0xaac   : > { %1615 = vmatpush3.bf16.msra.mxu0 %v1138_v25 }
 0xaad   : > { %1628 = vmatprep.subr.bf16.mxu0 %v1712_v8 }
 0xb27   : > { %v1074_v10 = vpop.xlane.xlu1 %1073 }
 0xb28   : > { %v1075_v11 = vsub.f32 %v1067_v4, %v1074_v10 }
 0xb2a   : > { %v1076_v12 = vmul.f32 1.442695, %v1075_v11 }
 0xb2b   : > { %v1085_v13 = vpop.permute.xlu1 %1084 }
 0xb2c   : > { %1696 = vpow2.f32 %v1076_v12  ;;  %v1090_v14 = vsel %vm612_vm3, %v1085_v13, 0 }
 0xb2d   : > { %1609 = vmatpush3.bf16.msra.mxu1 %v1090_v14 }
 0xb2e   : > { %1620 = vmatprep.subr.bf16.mxu1 %v1712_v8 }
 0xb36   : > { %v1697_v37 = vpop.eup %1696 }
 0xb37   : > { %v1078_v15 = vsel %vm548_vm2, %v1697_v37, 0.0 }
 0xb38   : > { %1079 = vadd.xlane.f32.xlu0 %v1078_v15 }
 0xb64   : > { %v1015_v17 = vpop.f32.mrb[24].mxu1 }
 0xb65   : > { %v1021_v18 = vadd.f32 %v1015_v17, %v1908_v38  ;;  %v1600_v19 = vpop.f32.mrb[25].mxu1 }
 0xb66   : > { %v1018_v20 = vpop.f32.mrb[26].mxu1 }
 0xb67   : > { %v1601_v21 = vpop.f32.mrb[27].mxu1 }
 0xbc5   : > { %v1080_v22 = vpop.xlane.xlu0 %1079 }
 0xbc6   : > { %1698 = vrcp.f32 %v1080_v22 }
 0xbd0   : > { %v1699_v23 = vpop.eup %1698 }
 0xbd1   : > { %v1082_v24 = vmul.f32 %v1699_v23, %v1697_v37  ;;  %v1490_v37 = vld [vmem:[%s2032_s12] ss:$0 sm:$0xff] }
 0xbd3   : > { %v1083_v26 = vpack.c.bf16 %v1082_v24, %v1082_v24 }
 0xbd5   : > { %1611 = vmatmul.mubr.msk.bf16.vlgmr.msra.gmra.mrb[28].mxu1 %vm548_vm2, %v1083_v26 }
 0xbd6   : > { %1624 = vmatprep.mubr.msk.bf16.mxu1 %vm1713_vm1, %v1712_v8  ;;  %1621 = vmatpush3.bf16.msra.mxu1 %v1672_v48 }
 0xbd7   : > { %1622 = vmatprep.subr.bf16.mxu1 %v1712_v8 }
 0xca8   : > { %v1126_v27 = vpop.f32.mrb[28].mxu1 }
 0xca9   : > { %v1132_v28 = vpack.c.bf16 %v1126_v27, %v1126_v27  ;;  %v1612_v29 = vpop.f32.mrb[29].mxu1 }
 0xcaa   : > { %v1129_v30 = vpop.f32.mrb[30].mxu1 }
 0xcab   : > { %v1613_v32 = vpop.f32.mrb[31].mxu1  ;;  %1617 = vmatmul.mubr.msk.bf16.vlgmr.msra.gmra.mrb[16].mxu0 %vm548_vm2, %v1132_v28 }
 0xcac   : > { %1644 = vmatprep.mubr.msk.bf16.mxu0 %vm1713_vm1, %v1712_v8  ;;  %1629 = vmatpush3.bf16.msra.mxu0 %v1674_v49 }
 0xcad   : > { %1630 = vmatprep.subr.bf16.mxu0 %v1712_v8 }
 0xcb0   : > { %1631 = vmatpush3.bf16.msra.mxu0 %v1675_v50 }
 0xcb1   : > { %1632 = vmatprep.subr.bf16.mxu0 %v1712_v8 }
 0xcb4   : > { %1633 = vmatpush3.bf16.msra.mxu0 %v1676_v51 }
 0xcb5   : > { %1634 = vmatprep.subr.bf16.mxu0 %v1712_v8 }
 0xcb8   : > { %1635 = vmatpush3.bf16.msra.mxu0 %v1677_v61 }
 0xcb9   : > { %1636 = vmatprep.subr.bf16.mxu0 %v1712_v8 }
 0xcbc   : > { %1637 = vmatpush3.bf16.msra.mxu0 %v1678_v62 }
 0xcbd   : > { %1638 = vmatprep.subr.bf16.mxu0 %v1712_v8 }
 0xcc0   : > { %1639 = vmatpush3.bf16.msra.mxu0 %v1679_v63 }
 0xcc1   : > { %1640 = vmatprep.subr.bf16.mxu0 %v1712_v8 }
 0xcc4   : > { %1641 = vmatpush3.bf16.msra.mxu0 %v1680_v1 }
 0xcc5   : > { %1642 = vmatprep.subr.bf16.mxu0 %v1712_v8 }
 0xcc8   : > { %1643 = vmatpush3.bf16.msra.mxu0 %v1681_v2 }
 0xd7e   : > { %v1174_v33 = vpop.f32.mrb[16].mxu0 }
 0xd7f   : > { %v1180_v34 = vadd.f32 %v1174_v33, %v1021_v18  ;;  %v1618_v35 = vpop.f32.mrb[17].mxu0 }
 0xd80   : > { %v1177_v38 = vpop.f32.mrb[18].mxu0 }
 0xd81   : > { %v1181_v39 = vadd.f32 %v1180_v34, %v1812_v0  ;;  %v1619_v40 = vpop.f32.mrb[19].mxu0  ;;  %v1673_v0 = vld [vmem:[%s2029_s9 + $0x8] sm:$0xff]  }
 0xd82   : > { %1623 = vmatpush3.bf16.msra.mxu1 %v1673_v0 }
 0xd83   : > { %v1953_v41 = vadd.f32 %v1483_v36, %v1181_v39 }
 0xd85   : > { %v1192_v42 = vsel %vm440_vm0, %v1953_v41, 0.0 }
 0xd86   : > { %1193 = vadd.xlane.f32.xlu1 %v1192_v42 }
 0xe13   : > { %v1194_v43 = vpop.xlane.xlu1 %1193 }
 0xe14   : > { %v1195_v44 = vmul.f32 0.03125, %v1194_v43 }
 0xe16   : > { %v1196_v45 = vsub.f32 %v1953_v41, %v1195_v44 }
 0xe18   : > { %v1197_v46 = vmul.f32 %v1196_v45, %v1196_v45 }
 0xe1a   : > { %v1198_v47 = vsel %vm440_vm0, %v1197_v46, 0.0 }
 0xe1b   : > { %1199 = vadd.xlane.f32.xlu0 %v1198_v47 }
 0xea8   : > { %v1200_v52 = vpop.xlane.xlu0 %1199 }
 0xea9   : > { %v1201_v53 = vmul.f32 0.03125, %v1200_v52 }
 0xeab   : > { %v1202_v54 = vadd.f32 1e-05, %v1201_v53 }
 0xead   : > { %1700 = vrsqrt.f32 %v1202_v54 }
 0xeb7   : > { %v1701_v55 = vpop.eup %1700 }
 0xeb8   : > { %v1204_v57 = vmul.f32 %v1701_v55, %v1196_v45 }
 0xeba   : > { %v1211_v59 = vmul.f32 %v1484_v56, %v1204_v57 }
 0xebc   : > { %v1218_v31 = vadd.f32 %v1485_v58, %v1211_v59 }
 0xebe   : > { %v1219_v60 = vpack.c.bf16 %v1218_v31, %v1218_v31 }
 0xec0   : > { %1625 = vmatmul.mubr.msk.bf16.vlgmr.msra.gmra.mrb[32].mxu1 %vm440_vm0, %v1219_v60 }
 0xf93   : > { %v1280_v4 = vpop.f32.mrb[32].mxu1 }
 0xf94   : > { %v1281_v5 = vadd.f32 %v1486_v3, %v1280_v4  ;;  %v1626_v6 = vpop.f32.mrb[33].mxu1 }
 0xf95   : > { %v1283_v7 = vpop.f32.mrb[34].mxu1 }
 0xf96   : > { %v1287_v9 = vmul.f32 0.70710677, %v1281_v5  ;;  %v1627_v10 = vpop.f32.mrb[35].mxu1  ;;  %v1286_v12 = vmul.f32 0.5, %v1281_v5 }
 0xf98   : > { %1702 = verf.f32 %v1287_v9 }
 0xfa2   : > { %v1703_v11 = vpop.eup %1702 }
 0xfa3   : > { %v1289_v8 = vadd.f32 1.0, %v1703_v11 }
 0xfa5   : > { %v1290_v13 = vmul.f32 %v1289_v8, %v1286_v12 }
 0xfa7   : > { %v1291_v14 = vpack.c.bf16 %v1290_v13, %v1290_v13 }
 0xfa9   : > { %1645 = vmatmul.mubr.bf16.vlgmr.msra.gmra.mrb[20].mxu0 %v1291_v14 }
0x107c   : > { %v1397_v15 = vpop.f32.mrb[20].mxu0 }
0x107d   : > { %v1398_v16 = vadd.f32 %v1490_v37, %v1397_v15  ;;  %v1646_v25 = vpop.f32.mrb[21].mxu0 }
0x107e   : > { %v1400_v17 = vpop.f32.mrb[22].mxu0 }
0x107f   : > { %v1403_v18 = vadd.f32 %v1398_v16, %v1953_v41  ;;  %v1647_v19 = vpop.f32.mrb[23].mxu0 }
0x1081   : > { %1404 = vst.msk [vmem:[%s435_s19] sm:$0xff] %vm440_vm0, %v1403_v18 }
0x1082 PF: > { %s23_s25 = sadd.s32 1, %s1710_s25  }
0x1083   : > { %p20_p4 = scmp.ge.s32.totalorder %s23_s25, 4  }
0x1085   :  { %22 = sbr.rel (!%p20_p4) target bundleno = 1 (0x1), region = 102 }

</bundles_post_ra>
